<compile_context>
chip_gen: v5e
topology: v5e:2x2
jax: 0.10.0
libtpu: 0.0.40
codegen_flags: <defaults>
</compile_context>

<pallas_src>
import functools

import jax
import jax.numpy as jnp
from jax.experimental import pallas as pl
from jax.experimental.pallas import tpu as pltpu


def _accuracy_kernel(a_ref, p_ref, n_ref, flag_ref, *, mar, batch, tb):
    i = pl.program_id(0)

    a = a_ref[...].astype(jnp.float32)
    p = p_ref[...].astype(jnp.float32)
    n = n_ref[...].astype(jnp.float32)

    diff_p = a - p
    diff_n = a - n
    # Fused reduction: sum(dn^2) - sum(dp^2) == sum(dn^2 - dp^2)
    elem = diff_n * diff_n - diff_p * diff_p          # (TB, D) elementwise
    row = jnp.sum(elem, axis=1, keepdims=True)        # (TB, 1) single XLU pass

    # Mask rows past the real batch (last block may be padded).
    row_ids = jax.lax.broadcasted_iota(jnp.int32, (tb, 1), 0) + i * tb
    valid = row_ids < batch

    correct = jnp.logical_and(valid, row > mar)       # pred = row - mar > 0
    flag_ref[...] = correct.astype(jnp.float32)


def _round_up(x, m):
    return ((x + m - 1) // m) * m


def _choose_tb(batch, dim, itemsize):
    # 3 inputs x 2 pipeline buffers x (TB * D * itemsize) bytes <= ~24 MiB.
    budget_bytes = 24 * 1024 * 1024
    per_row = 3 * 2 * dim * itemsize
    tb = max(8, budget_bytes // per_row)
    tb = min(tb, _round_up(batch, 8))                 # don't exceed (padded) batch
    tb = max(8, (tb // 8) * 8)                        # sublane alignment
    return int(tb)


def accuracy(anchor, positive, negative, mar):
    """Triplet accuracy: fraction of rows where d_neg - d_pos > mar."""
    assert anchor.shape == positive.shape == negative.shape
    B, D = anchor.shape
    itemsize = jnp.dtype(anchor.dtype).itemsize

    tb = _choose_tb(B, D, itemsize)
    num_blocks = pl.cdiv(B, tb)

    kernel = functools.partial(_accuracy_kernel, mar=float(mar), batch=B, tb=tb)

    in_spec = pl.BlockSpec((tb, D), lambda i: (i, 0))
    flags = pl.pallas_call(
        kernel,
        out_shape=jax.ShapeDtypeStruct((B, 1), jnp.float32),
        grid=(num_blocks,),
        in_specs=[in_spec, in_spec, in_spec],
        out_specs=pl.BlockSpec((tb, 1), lambda i: (i, 0)),
        compiler_params=pltpu.CompilerParams(
            dimension_semantics=("parallel",),
            vmem_limit_bytes=32 * 1024 * 1024,
        ),
        cost_estimate=pl.CostEstimate(
            flops=6 * B * D,
            transcendentals=0,
            bytes_accessed=3 * B * D * itemsize + B * 4,
        ),
    )(anchor, positive, negative)

    # Final count / divide in XLA (cheap; keeps the grid axis parallel).
    return jnp.sum(flags) / jnp.float32(B)


def _reference(anchor, positive, negative, mar):
    dp = jnp.sum((anchor - positive) ** 2, axis=1)
    dn = jnp.sum((anchor - negative) ** 2, axis=1)
    pred = dn - dp - mar
    return jnp.sum((pred > 0).astype(jnp.float32)) / anchor.shape[0]


if __name__ == "__main__":
    key = jax.random.PRNGKey(0)
    k_a, k_p, k_n = jax.random.split(key, 3)

    B, D = 8, 32          # small shapes: batch=8 embeddings of dim 32
    mar = 0.2             # margin, as in Accuracy(mar)

    anchor = jax.random.normal(k_a, (B, D), dtype=jnp.float32)
    positive = anchor + 0.1 * jax.random.normal(k_p, (B, D), dtype=jnp.float32)
    negative = jax.random.normal(k_n, (B, D), dtype=jnp.float32)

    acc = accuracy(anchor, positive, negative, mar)
    acc = jax.block_until_ready(acc)

    ref = jax.block_until_ready(_reference(anchor, positive, negative, mar))
    assert abs(float(acc) - float(ref)) < 1e-6, (float(acc), float(ref))

    print("KERNEL_OK")
</pallas_src>

<mosaic_0001>
module attributes {stable_mosaic.version = 11 : i64} {
  func.func @_accuracy_kernel(%arg0: i32, %arg1: memref<8x32xf32, #tpu.memory_space<vmem>>, %arg2: memref<8x32xf32, #tpu.memory_space<vmem>>, %arg3: memref<8x32xf32, #tpu.memory_space<vmem>>, %arg4: memref<8x1xf32, #tpu.memory_space<vmem>>) attributes {dimension_semantics = [#tpu.dimension_semantics<parallel>], iteration_bounds = array<i64: 1>, scalar_prefetch = 0 : i64, scratch_operands = 0 : i64, tpu.core_type = #tpu.core_type<tc>, window_params = [{transform_indices = @transform_0, window_bounds = array<i64: 8, 32>}, {transform_indices = @transform_1, window_bounds = array<i64: 8, 32>}, {transform_indices = @transform_2, window_bounds = array<i64: 8, 32>}, {transform_indices = @transform_3, window_bounds = array<i64: 8, 1>}]} {
    %c0 = arith.constant 0 : index
    %c0_0 = arith.constant 0 : index
    %0 = vector.load %arg1[%c0, %c0_0] : memref<8x32xf32, #tpu.memory_space<vmem>>, vector<8x32xf32>
    %c0_1 = arith.constant 0 : index
    %c0_2 = arith.constant 0 : index
    %1 = vector.load %arg2[%c0_1, %c0_2] : memref<8x32xf32, #tpu.memory_space<vmem>>, vector<8x32xf32>
    %c0_3 = arith.constant 0 : index
    %c0_4 = arith.constant 0 : index
    %2 = vector.load %arg3[%c0_3, %c0_4] : memref<8x32xf32, #tpu.memory_space<vmem>>, vector<8x32xf32>
    %3 = arith.subf %0, %1 : vector<8x32xf32>
    %4 = arith.subf %0, %2 : vector<8x32xf32>
    %5 = arith.mulf %4, %4 : vector<8x32xf32>
    %6 = arith.mulf %3, %3 : vector<8x32xf32>
    %7 = arith.subf %5, %6 : vector<8x32xf32>
    %cst = arith.constant dense<0.000000e+00> : vector<8xf32>
    %8 = vector.multi_reduction <add>, %7, %cst [1] : vector<8x32xf32> to vector<8xf32>
    %9 = vector.shape_cast %8 : vector<8xf32> to vector<8x1xf32>
    %10 = tpu.iota {dimensions = array<i32: 0>} : vector<8x1xi32>
    %c8_i32 = arith.constant 8 : i32
    %11 = arith.muli %arg0, %c8_i32 : i32
    %12 = vector.broadcast %11 : i32 to vector<8x1xi32>
    %13 = arith.addi %10, %12 : vector<8x1xi32>
    %c8_i32_5 = arith.constant 8 : i32
    %14 = vector.broadcast %c8_i32_5 : i32 to vector<8x1xi32>
    %15 = arith.cmpi slt, %13, %14 : vector<8x1xi32>
    %cst_6 = arith.constant 2.000000e-01 : f32
    %16 = vector.broadcast %cst_6 : f32 to vector<8x1xf32>
    %17 = arith.cmpf ogt, %9, %16 : vector<8x1xf32>
    %18 = arith.andi %15, %17 : vector<8x1xi1>
    %19 = arith.extui %18 : vector<8x1xi1> to vector<8x1xi32>
    %20 = arith.sitofp %19 : vector<8x1xi32> to vector<8x1xf32>
    %c0_7 = arith.constant 0 : index
    %c0_8 = arith.constant 0 : index
    %21 = vector.load %arg4[%c0_7, %c0_8] : memref<8x1xf32, #tpu.memory_space<vmem>>, vector<8x1xf32>
    tpu.vector_store %arg4[%c0_7, %c0_8], %20 {strides = array<i32>} : memref<8x1xf32, #tpu.memory_space<vmem>>, vector<8x1xf32>,
    return
  }
  func.func @transform_0(%arg0: i32) -> (i32, i32) {
    %c0_i32 = arith.constant 0 : i32
    %c0_i32_0 = arith.constant 0 : i32
    return %arg0, %c0_i32 : i32, i32
  }
  func.func @transform_1(%arg0: i32) -> (i32, i32) {
    %c0_i32 = arith.constant 0 : i32
    %c0_i32_0 = arith.constant 0 : i32
    return %arg0, %c0_i32 : i32, i32
  }
  func.func @transform_2(%arg0: i32) -> (i32, i32) {
    %c0_i32 = arith.constant 0 : i32
    %c0_i32_0 = arith.constant 0 : i32
    return %arg0, %c0_i32 : i32, i32
  }
  func.func @transform_3(%arg0: i32) -> (i32, i32) {
    %c0_i32 = arith.constant 0 : i32
    %c0_i32_0 = arith.constant 0 : i32
    return %arg0, %c0_i32 : i32, i32
  }
}

</mosaic_0001>

<bundles_post_ra>
// kernel: tpu_custom_call.1
= control target key start
LH: loop header
LB: loop body
LE: loop exit
PB: predicated region body
PF: predicated region fallthrough
CT: control target
= control target key end

     0   :  { %8 = vsyncpa [#allocation3], 0  ;;  %s202_s0 = inlined_call_operand.hbm [shape: f32[8,32], index: 0, kind: input, shape index: {}]   ;;  %s203_s1 = inlined_call_operand.hbm [shape: f32[8,32], index: 1, kind: input, shape index: {}]   ;;  %s204_s2 = inlined_call_operand.hbm [shape: f32[8,32], index: 2, kind: input, shape index: {}]   ;;  %s205_s3 = inlined_call_operand.vmem [shape: f32[8,1], index: 3, kind: output, shape index: {}]  }
   0x1   :  { %9 = vsyncpa [#allocation5], 0  ;;  %s26_s14 = sshll.u32 %s203_s1, 4  ;;  %s166_s15 = smov [#allocation4]   ;;  %s27_s14 = int_to_ptr.hbm [resolvable:$true] %s26_s14 }
   0x2   :  { %s28_s16 = sshll.u32 %s166_s15, 4  ;;  %s15_s19 = sshll.u32 %s202_s0, 4  ;;  %s29_s16 = int_to_ptr.vmem [resolvable:$true] %s28_s16  ;;  %s16_s19 = int_to_ptr.hbm [resolvable:$true] %s15_s19 }
   0x3   :  { %31 = dma.hbm_to_vmem [thread:$0]  %s27_s14, 128, %s29_s16, [#allocation5]  }
   0x4   :  { %s167_s20 = smov [#allocation2]   ;;  %s37_s24 = sshll.u32 %s204_s2, 4  ;;  %s38_s24 = int_to_ptr.hbm [resolvable:$true] %s37_s24 }
   0x5   :  { %s17_s21 = sshll.u32 %s167_s20, 4  ;;  %s168_s1 = smov [#allocation6]   ;;  %s18_s21 = int_to_ptr.vmem [resolvable:$true] %s17_s21 }
   0x6   :  { %20 = dma.hbm_to_vmem [thread:$0]  %s16_s19, 128, %s18_s21, [#allocation3]  }
   0x7   :  { %s39_s25 = sshll.u32 %s168_s1, 4  ;;  %s40_s25 = int_to_ptr.vmem [resolvable:$true] %s39_s25 }
   0x8   :  { %42 = dma.hbm_to_vmem [thread:$0]  %s38_s24, 128, %s40_s25, [#allocation5]  }
   0x9   :  { %162 = dma.done.wait [#allocation3], 128  }
   0xa   :  { %163 = vsyncadd [#allocation3], 4294967168 }
   0xb   :  { %164 = dma.done.wait [#allocation5], 256  }
   0xc   :  { %165 = vsyncadd [#allocation5], 4294967040  ;;  %v55_v0 = vld [vmem:[#allocation2] sm:$0xff]  ;;  %v56_v1 = vld [vmem:[#allocation4] sm:$0xff]  ;;  %vm63_vm0 = vcmask 261120   ;;  %vm77_vm1 = vcmask 7168  }
   0xd   :  { %v57_v2 = vld [vmem:[#allocation6] sm:$0xff]  ;;  %v58_v3 = vsub.f32 %v55_v0, %v56_v1  ;;  %v169_v10 = vmov 0.0  }
   0xe   :  { %v59_v4 = vsub.f32 %v55_v0, %v57_v2 }
   0xf   :  { %v61_v6 = vmul.f32 %v58_v3, %v58_v3 }
  0x10   :  { %v60_v5 = vmul.f32 %v59_v4, %v59_v4 }
  0x12   :  { %v62_v7 = vsub.f32 %v60_v5, %v61_v6 }
  0x14   :  { %v64_v8 = vsel %vm63_vm0, %v62_v7, 0.0 }
  0x15   :  { %65 = vadd.xlane.f32.xlu0 %v64_v8 }
  0x88   :  { %v66_v9 = vpop.xlane.xlu0 %65 }
  0x89   :  { %vm73_vm2 = vcmp.gt.f32.partialorder %v66_v9, 0.2 }
  0x8a   :  { %v85_v11 = vsel %vm73_vm2, 1.0, %v169_v10 }
  0x8b   :  { %78 = vst.msk [vmem:[%s205_s3] sm:$0xff] %vm77_vm1, %v85_v11 }
  0x8c   :  { %83 = vsyncpa [#allocation3], 1 }
  0x8d   :  { %84 = vsyncpa [#allocation5], 1 }

</bundles_post_ra>
